<compile_context>
chip_gen: v7x
topology: tpu7x:2x2x1
jax: 0.10.0
libtpu: 0.0.40
codegen_flags: <defaults>
</compile_context>

<pallas_src>
import functools

import jax
import jax.numpy as jnp
import numpy as np
from jax.experimental import pallas as pl
from jax.experimental.pallas import tpu as pltpu


# ----------------------------------------------------------------------------
# MADE mask construction (numpy, matches create_masks(..., 'sequential', None))
# ----------------------------------------------------------------------------
def create_masks(input_size, hidden_size, n_hidden):
    degrees = [np.arange(input_size)]
    for _ in range(n_hidden + 1):
        degrees.append(np.arange(hidden_size) % (input_size - 1))
    degrees.append(np.arange(input_size) % input_size - 1)

    masks = []
    for d0, d1 in zip(degrees[:-1], degrees[1:]):
        masks.append((d1[:, None] >= d0[None, :]).astype(np.float32))  # [out, in]
    return masks, degrees[0]


# ----------------------------------------------------------------------------
# Parameter init (mimics nn.Linear default U(-1/sqrt(in), 1/sqrt(in))).
# Weights are stored PyTorch-style [out, in] with the mask already applied.
# ----------------------------------------------------------------------------
def init_mademog_params(key, n_components, input_size, hidden_size, n_hidden):
    masks, _ = create_masks(input_size, hidden_size, n_hidden)
    # last mask is tiled .repeat(n_components * 3, 1) like the PyTorch module
    layer_masks = masks[:-1] + [np.tile(masks[-1], (3 * n_components, 1))]

    params = []
    for m in layer_masks:
        out_dim, in_dim = m.shape
        key, kw, kb = jax.random.split(key, 3)
        bound = 1.0 / np.sqrt(in_dim)
        w = jax.random.uniform(kw, (out_dim, in_dim), jnp.float32, -bound, bound)
        b = jax.random.uniform(kb, (out_dim,), jnp.float32, -bound, bound)
        params.append((w * jnp.asarray(m), b))  # mask baked in
    return params


# ----------------------------------------------------------------------------
# Pallas kernel: full MADEMOG forward for one batch tile (feature-major).
# x_ref: (D, TB); weights: (out, in); biases: (out, 1); out: (3*C*D, TB)
# Output rows: [u (C*D) | -loga (C*D) | logr - logsumexp_c(logr) (C*D)],
# each block ordered component-major (row = c*D + i).
# Note: keep D a multiple of 8 (sublane tile) so every slice below is a
# zero-cost view; non-multiples still run correctly, just slower.
# ----------------------------------------------------------------------------
def mademog_kernel(x_ref, *refs, n_layers, n_components):
    wb_refs = refs[: 2 * n_layers]
    out_ref = refs[2 * n_layers]

    x = x_ref[...]                                   # (D, TB) f32
    h = x
    for li in range(n_layers):                       # unrolled at trace time
        w = wb_refs[2 * li][...]                     # (out, in)
        b = wb_refs[2 * li + 1][...]                 # (out, 1)
        if li > 0:
            h = jnp.maximum(h, 0.0)                  # ReLU before every layer but the first
        h = jnp.dot(w, h, preferred_element_type=jnp.float32) + b

    D = x.shape[0]
    C = n_components
    CD = C * D

    # log-sum-exp over the component axis of logr (rows 2*CD + c*D + i).
    mx = h[2 * CD:2 * CD + D, :]
    for c in range(1, C):
        mx = jnp.maximum(mx, h[2 * CD + c * D:2 * CD + (c + 1) * D, :])
    ssum = jnp.exp(h[2 * CD:2 * CD + D, :] - mx)
    for c in range(1, C):
        ssum = ssum + jnp.exp(h[2 * CD + c * D:2 * CD + (c + 1) * D, :] - mx)
    lse = mx + jnp.log(ssum)                         # (D, TB)

    # Direct, lane-dense slice stores -- no concatenates, one small (D, TB)
    # live value per statement.
    for c in range(C):
        m_c = h[c * D:(c + 1) * D, :]
        loga_c = h[CD + c * D:CD + (c + 1) * D, :]
        logr_c = h[2 * CD + c * D:2 * CD + (c + 1) * D, :]
        out_ref[c * D:(c + 1) * D, :] = (x - m_c) * jnp.exp(-loga_c)        # u
        out_ref[CD + c * D:CD + (c + 1) * D, :] = -loga_c                   # log|det J|
        out_ref[2 * CD + c * D:2 * CD + (c + 1) * D, :] = logr_c - lse      # normalized logr


# ----------------------------------------------------------------------------
# Tile selection: lane-dim tile (multiple of 128), per TPU generation.
# ----------------------------------------------------------------------------
def _num_tensorcores_per_device():
    # v7x-class chips expose 2 TensorCores per Pallas device (shared via the
    # "parallel" grid axis); v5e/v6e have one.  Fall back to 1 if unknown.
    try:
        kind = jax.devices()[0].device_kind.lower()
    except Exception:
        return 1
    return 2 if "v7" in kind else 1


def _pick_tile_b(padded_batch, *, d, c, weight_bytes, num_cores,
                 vmem_budget=12 * 1024 * 1024):
    assert padded_batch % 128 == 0
    cands = [t for t in range(128, padded_batch + 1, 128) if padded_batch % t == 0]

    cd3 = 3 * c * d

    def vmem_est(t):
        x_tile = d * t * 4
        out_tile = cd3 * t * 4
        # double-buffered input/output tiles + double-buffered grid-invariant
        # weights + a couple of live intermediates inside the body.
        return 2 * (x_tile + out_tile) + 2 * weight_bytes + 2 * out_tile

    fitting = [t for t in cands if vmem_est(t) <= vmem_budget]
    cands = fitting if fitting else [cands[0]]

    if num_cores >= 2:
        # Keep >= num_cores (balanced) grid steps so every TensorCore gets work.
        multi = [t for t in cands if padded_batch // t >= num_cores]
        return max(multi) if multi else max(cands)
    # Single TensorCore: biggest legal tile (often grid=1) to amortize the
    # ~0.35us fixed per-grid-step overhead.
    return max(cands)


# ----------------------------------------------------------------------------
# Wrapper: layout plumbing + pallas_call
# ----------------------------------------------------------------------------
def mademog_forward(x, params, n_components, *, tile_b=None):
    B, D = x.shape
    C = n_components
    CD = C * D
    n_layers = len(params)

    # Pad the batch to a multiple of 128 so it can live in the lane dimension.
    B_pad = ((B + 127) // 128) * 128
    if B_pad != B:
        x_in = jnp.concatenate([x, jnp.zeros((B_pad - B, D), x.dtype)], axis=0)
    else:
        x_in = x

    # feature-major: batch in lanes
    x_t = x_in.T                                     # (D, B_pad)

    # Permute the final-layer rows from PyTorch's interleave (c, t, i) to
    # (t, c, i) so m / loga / logr form contiguous row blocks in the kernel.
    prepped = []
    weight_bytes = 0
    for li, (w, b) in enumerate(params):
        if li == n_layers - 1:
            H = w.shape[1]
            w = w.reshape(C, 3, D, H).transpose(1, 0, 2, 3).reshape(3 * CD, H)
            b = b.reshape(C, 3, D).transpose(1, 0, 2).reshape(3 * CD)
        b = b.reshape(-1, 1)
        prepped.append((w, b))
        weight_bytes += (w.size + b.size) * 4

    if tile_b is None:
        tile_b = _pick_tile_b(B_pad, d=D, c=C, weight_bytes=int(weight_bytes),
                              num_cores=_num_tensorcores_per_device())
    assert B_pad % tile_b == 0 and tile_b % 128 == 0

    in_specs = [pl.BlockSpec((D, tile_b), lambda i: (0, i))]
    args = [x_t]
    for w, b in prepped:
        # Grid-invariant operands (constant index_map): fetched once, resident
        # across grid steps.
        in_specs.append(pl.BlockSpec(w.shape, lambda i: (0, 0)))
        in_specs.append(pl.BlockSpec(b.shape, lambda i: (0, 0)))
        args += [w, b]

    out_rows = 3 * CD

    # Advisory cost estimate so XLA can overlap this tiny kernel.
    flops = int(2 * B_pad * sum(int(w.shape[0]) * int(w.shape[1]) for w, _ in prepped))
    transcendentals = int(B_pad * (2 * CD + D))
    bytes_accessed = int((x_t.size + out_rows * B_pad) * 4 + weight_bytes)
    ce = pl.CostEstimate(flops=flops, transcendentals=transcendentals,
                         bytes_accessed=bytes_accessed)

    fn = pl.pallas_call(
        functools.partial(mademog_kernel, n_layers=n_layers, n_components=C),
        grid=(B_pad // tile_b,),
        in_specs=in_specs,
        out_specs=pl.BlockSpec((out_rows, tile_b), lambda i: (0, i)),
        out_shape=jax.ShapeDtypeStruct((out_rows, B_pad), jnp.float32),
        compiler_params=pltpu.CompilerParams(dimension_semantics=("parallel",)),
        cost_estimate=ce,
    )
    out = fn(*args)                                  # (3*C*D, B_pad)

    # Strip batch padding, then ONE transpose + cheap reshape/slices
    # (instead of three strided full-slab transposes).
    if B_pad != B:
        out = out[:, :B]
    out_btcd = out.T.reshape(B, 3, C, D)             # last axis order was (t, c, i)
    u = out_btcd[:, 0]                               # (B, C, D)
    log_abs_det_jacobian = out_btcd[:, 1]            # (B, C, D)
    logr = out_btcd[:, 2]                            # == self.logr in the PyTorch module
    return u, log_abs_det_jacobian, logr


# ----------------------------------------------------------------------------
# Pure-JAX reference (mirrors the PyTorch forward exactly)
# ----------------------------------------------------------------------------
def mademog_forward_ref(x, params, n_components):
    N, D = x.shape
    C = n_components
    h = x
    for li, (w, b) in enumerate(params):
        if li > 0:
            h = jnp.maximum(h, 0.0)
        h = h @ w.T + b
    h = h.reshape(N, C, 3 * D)
    m, loga, logr = h[..., :D], h[..., D:2 * D], h[..., 2 * D:]
    x_rep = jnp.broadcast_to(x[:, None, :], (N, C, D))
    u = (x_rep - m) * jnp.exp(-loga)
    logdet = -loga
    mx = jnp.max(logr, axis=1, keepdims=True)
    lse = mx + jnp.log(jnp.sum(jnp.exp(logr - mx), axis=1, keepdims=True))
    return u, logdet, logr - lse


def _check(x, params, n_components):
    u, logdet, logr = mademog_forward(x, params, n_components)
    u, logdet, logr = jax.block_until_ready((u, logdet, logr))
    u_ref, logdet_ref, logr_ref = mademog_forward_ref(x, params, n_components)
    np.testing.assert_allclose(np.asarray(u), np.asarray(u_ref), rtol=1e-5, atol=1e-5)
    np.testing.assert_allclose(np.asarray(logdet), np.asarray(logdet_ref), rtol=1e-5, atol=1e-5)
    np.testing.assert_allclose(np.asarray(logr), np.asarray(logr_ref), rtol=1e-5, atol=1e-5)


if __name__ == "__main__":
    n_components = 2    # C
    input_size = 8      # D (L)
    hidden_size = 32    # H
    n_hidden = 1
    batch = 512         # multiple of 128 -> no padding needed

    key = jax.random.PRNGKey(0)
    key, kx = jax.random.split(key)
    x = jax.random.normal(kx, (batch, input_size), jnp.float32)

    params = init_mademog_params(key, n_components, input_size, hidden_size, n_hidden)

    # Main check (multiple-of-128 batch).
    _check(x, params, n_components)

    # Robustness check: arbitrary batch size exercises the padding path.
    _check(x[:200], params, n_components)

    print("KERNEL_OK")
</pallas_src>

<mosaic_0001>
module attributes {stable_mosaic.version = 11 : i64} {
  func.func @mademog_kernel(%arg0: i32, %arg1: memref<8x512xf32, #tpu.memory_space<vmem>>, %arg2: memref<32x8xf32, #tpu.memory_space<vmem>>, %arg3: memref<32x1xf32, #tpu.memory_space<vmem>>, %arg4: memref<32x32xf32, #tpu.memory_space<vmem>>, %arg5: memref<32x1xf32, #tpu.memory_space<vmem>>, %arg6: memref<48x32xf32, #tpu.memory_space<vmem>>, %arg7: memref<48x1xf32, #tpu.memory_space<vmem>>, %arg8: memref<48x512xf32, #tpu.memory_space<vmem>>) attributes {dimension_semantics = [#tpu.dimension_semantics<parallel>], iteration_bounds = array<i64: 1>, scalar_prefetch = 0 : i64, scratch_operands = 0 : i64, tpu.core_type = #tpu.core_type<tc>, window_params = [{transform_indices = @transform_0, window_bounds = array<i64: 8, 512>}, {pipeline_mode = #tpu.pipeline_mode<synchronous>, transform_indices = @transform_1, window_bounds = array<i64: 32, 8>}, {pipeline_mode = #tpu.pipeline_mode<synchronous>, transform_indices = @transform_2, window_bounds = array<i64: 32, 1>}, {pipeline_mode = #tpu.pipeline_mode<synchronous>, transform_indices = @transform_3, window_bounds = array<i64: 32, 32>}, {pipeline_mode = #tpu.pipeline_mode<synchronous>, transform_indices = @transform_4, window_bounds = array<i64: 32, 1>}, {pipeline_mode = #tpu.pipeline_mode<synchronous>, transform_indices = @transform_5, window_bounds = array<i64: 48, 32>}, {pipeline_mode = #tpu.pipeline_mode<synchronous>, transform_indices = @transform_6, window_bounds = array<i64: 48, 1>}, {transform_indices = @transform_7, window_bounds = array<i64: 48, 512>}]} {
    %c0 = arith.constant 0 : index
    %c0_0 = arith.constant 0 : index
    %0 = vector.load %arg1[%c0, %c0_0] : memref<8x512xf32, #tpu.memory_space<vmem>>, vector<8x512xf32>
    %c0_1 = arith.constant 0 : index
    %c0_2 = arith.constant 0 : index
    %1 = vector.load %arg2[%c0_1, %c0_2] : memref<32x8xf32, #tpu.memory_space<vmem>>, vector<32x8xf32>
    %c0_3 = arith.constant 0 : index
    %c0_4 = arith.constant 0 : index
    %2 = vector.load %arg3[%c0_3, %c0_4] : memref<32x1xf32, #tpu.memory_space<vmem>>, vector<32x1xf32>
    %cst = arith.constant dense<0.000000e+00> : vector<32x512xf32>
    %3 = tpu.matmul %1, %0, %cst {dimension_numbers = #tpu.dot_dimension_numbers<[1], [0], [0], [1], [0, 0, 1, 1], [], []>} : vector<32x8xf32>, vector<8x512xf32>, vector<32x512xf32> -> vector<32x512xf32>
    %4 = vector.broadcast %2 : vector<32x1xf32> to vector<32x512xf32>
    %5 = arith.addf %3, %4 : vector<32x512xf32>
    %c0_5 = arith.constant 0 : index
    %c0_6 = arith.constant 0 : index
    %6 = vector.load %arg4[%c0_5, %c0_6] : memref<32x32xf32, #tpu.memory_space<vmem>>, vector<32x32xf32>
    %c0_7 = arith.constant 0 : index
    %c0_8 = arith.constant 0 : index
    %7 = vector.load %arg5[%c0_7, %c0_8] : memref<32x1xf32, #tpu.memory_space<vmem>>, vector<32x1xf32>
    %cst_9 = arith.constant 0.000000e+00 : f32
    %8 = vector.broadcast %cst_9 : f32 to vector<32x512xf32>
    %9 = arith.maximumf %5, %8 : vector<32x512xf32>
    %cst_10 = arith.constant dense<0.000000e+00> : vector<32x512xf32>
    %10 = tpu.matmul %6, %9, %cst_10 {dimension_numbers = #tpu.dot_dimension_numbers<[1], [0], [0], [1], [0, 0, 1, 1], [], []>} : vector<32x32xf32>, vector<32x512xf32>, vector<32x512xf32> -> vector<32x512xf32>
    %11 = vector.broadcast %7 : vector<32x1xf32> to vector<32x512xf32>
    %12 = arith.addf %10, %11 : vector<32x512xf32>
    %c0_11 = arith.constant 0 : index
    %c0_12 = arith.constant 0 : index
    %13 = vector.load %arg6[%c0_11, %c0_12] : memref<48x32xf32, #tpu.memory_space<vmem>>, vector<48x32xf32>
    %c0_13 = arith.constant 0 : index
    %c0_14 = arith.constant 0 : index
    %14 = vector.load %arg7[%c0_13, %c0_14] : memref<48x1xf32, #tpu.memory_space<vmem>>, vector<48x1xf32>
    %cst_15 = arith.constant 0.000000e+00 : f32
    %15 = vector.broadcast %cst_15 : f32 to vector<32x512xf32>
    %16 = arith.maximumf %12, %15 : vector<32x512xf32>
    %cst_16 = arith.constant dense<0.000000e+00> : vector<48x512xf32>
    %17 = tpu.matmul %13, %16, %cst_16 {dimension_numbers = #tpu.dot_dimension_numbers<[1], [0], [0], [1], [0, 0, 1, 1], [], []>} : vector<48x32xf32>, vector<32x512xf32>, vector<48x512xf32> -> vector<48x512xf32>
    %18 = vector.broadcast %14 : vector<48x1xf32> to vector<48x512xf32>
    %19 = arith.addf %17, %18 : vector<48x512xf32>
    %20 = vector.extract_strided_slice %19 {offsets = [32, 0], sizes = [8, 512], strides = [1, 1]} : vector<48x512xf32> to vector<8x512xf32>
    %21 = vector.extract_strided_slice %19 {offsets = [40, 0], sizes = [8, 512], strides = [1, 1]} : vector<48x512xf32> to vector<8x512xf32>
    %22 = arith.maximumf %20, %21 : vector<8x512xf32>
    %23 = vector.extract_strided_slice %19 {offsets = [32, 0], sizes = [8, 512], strides = [1, 1]} : vector<48x512xf32> to vector<8x512xf32>
    %24 = arith.subf %23, %22 : vector<8x512xf32>
    %25 = math.exp %24 : vector<8x512xf32>
    %26 = vector.extract_strided_slice %19 {offsets = [40, 0], sizes = [8, 512], strides = [1, 1]} : vector<48x512xf32> to vector<8x512xf32>
    %27 = arith.subf %26, %22 : vector<8x512xf32>
    %28 = math.exp %27 : vector<8x512xf32>
    %29 = arith.addf %25, %28 : vector<8x512xf32>
    %30 = math.log %29 : vector<8x512xf32>
    %31 = arith.addf %22, %30 : vector<8x512xf32>
    %32 = vector.extract_strided_slice %19 {offsets = [0, 0], sizes = [8, 512], strides = [1, 1]} : vector<48x512xf32> to vector<8x512xf32>
    %33 = vector.extract_strided_slice %19 {offsets = [16, 0], sizes = [8, 512], strides = [1, 1]} : vector<48x512xf32> to vector<8x512xf32>
    %34 = vector.extract_strided_slice %19 {offsets = [32, 0], sizes = [8, 512], strides = [1, 1]} : vector<48x512xf32> to vector<8x512xf32>
    %35 = arith.subf %0, %32 : vector<8x512xf32>
    %cst_17 = arith.constant 0.000000e+00 : f32
    %36 = vector.broadcast %cst_17 : f32 to vector<8x512xf32>
    %37 = arith.subf %36, %33 : vector<8x512xf32>
    %38 = math.exp %37 : vector<8x512xf32>
    %39 = arith.mulf %35, %38 : vector<8x512xf32>
    %c0_18 = arith.constant 0 : index
    %c0_19 = arith.constant 0 : index
    %40 = vector.load %arg8[%c0_18, %c0_19] : memref<48x512xf32, #tpu.memory_space<vmem>>, vector<8x512xf32>
    tpu.vector_store %arg8[%c0_18, %c0_19], %39 {strides = array<i32>} : memref<48x512xf32, #tpu.memory_space<vmem>>, vector<8x512xf32>,
    %cst_20 = arith.constant 0.000000e+00 : f32
    %41 = vector.broadcast %cst_20 : f32 to vector<8x512xf32>
    %42 = arith.subf %41, %33 : vector<8x512xf32>
    %c16 = arith.constant 16 : index
    %c0_21 = arith.constant 0 : index
    %43 = vector.load %arg8[%c16, %c0_21] : memref<48x512xf32, #tpu.memory_space<vmem>>, vector<8x512xf32>
    tpu.vector_store %arg8[%c16, %c0_21], %42 {strides = array<i32>} : memref<48x512xf32, #tpu.memory_space<vmem>>, vector<8x512xf32>,
    %44 = arith.subf %34, %31 : vector<8x512xf32>
    %c32 = arith.constant 32 : index
    %c0_22 = arith.constant 0 : index
    %45 = vector.load %arg8[%c32, %c0_22] : memref<48x512xf32, #tpu.memory_space<vmem>>, vector<8x512xf32>
    tpu.vector_store %arg8[%c32, %c0_22], %44 {strides = array<i32>} : memref<48x512xf32, #tpu.memory_space<vmem>>, vector<8x512xf32>,
    %46 = vector.extract_strided_slice %19 {offsets = [8, 0], sizes = [8, 512], strides = [1, 1]} : vector<48x512xf32> to vector<8x512xf32>
    %47 = vector.extract_strided_slice %19 {offsets = [24, 0], sizes = [8, 512], strides = [1, 1]} : vector<48x512xf32> to vector<8x512xf32>
    %48 = vector.extract_strided_slice %19 {offsets = [40, 0], sizes = [8, 512], strides = [1, 1]} : vector<48x512xf32> to vector<8x512xf32>
    %49 = arith.subf %0, %46 : vector<8x512xf32>
    %cst_23 = arith.constant 0.000000e+00 : f32
    %50 = vector.broadcast %cst_23 : f32 to vector<8x512xf32>
    %51 = arith.subf %50, %47 : vector<8x512xf32>
    %52 = math.exp %51 : vector<8x512xf32>
    %53 = arith.mulf %49, %52 : vector<8x512xf32>
    %c8 = arith.constant 8 : index
    %c0_24 = arith.constant 0 : index
    %54 = vector.load %arg8[%c8, %c0_24] : memref<48x512xf32, #tpu.memory_space<vmem>>, vector<8x512xf32>
    tpu.vector_store %arg8[%c8, %c0_24], %53 {strides = array<i32>} : memref<48x512xf32, #tpu.memory_space<vmem>>, vector<8x512xf32>,
    %cst_25 = arith.constant 0.000000e+00 : f32
    %55 = vector.broadcast %cst_25 : f32 to vector<8x512xf32>
    %56 = arith.subf %55, %47 : vector<8x512xf32>
    %c24 = arith.constant 24 : index
    %c0_26 = arith.constant 0 : index
    %57 = vector.load %arg8[%c24, %c0_26] : memref<48x512xf32, #tpu.memory_space<vmem>>, vector<8x512xf32>
    tpu.vector_store %arg8[%c24, %c0_26], %56 {strides = array<i32>} : memref<48x512xf32, #tpu.memory_space<vmem>>, vector<8x512xf32>,
    %58 = arith.subf %48, %31 : vector<8x512xf32>
    %c40 = arith.constant 40 : index
    %c0_27 = arith.constant 0 : index
    %59 = vector.load %arg8[%c40, %c0_27] : memref<48x512xf32, #tpu.memory_space<vmem>>, vector<8x512xf32>
    tpu.vector_store %arg8[%c40, %c0_27], %58 {strides = array<i32>} : memref<48x512xf32, #tpu.memory_space<vmem>>, vector<8x512xf32>,
    return
  }
  func.func @transform_0(%arg0: i32) -> (i32, i32) {
    %c0_i32 = arith.constant 0 : i32
    %c0_i32_0 = arith.constant 0 : i32
    return %c0_i32, %arg0 : i32, i32
  }
  func.func @transform_1(%arg0: i32) -> (i32, i32) {
    %c0_i32 = arith.constant 0 : i32
    %c0_i32_0 = arith.constant 0 : i32
    %c0_i32_1 = arith.constant 0 : i32
    return %c0_i32, %c0_i32_0 : i32, i32
  }
  func.func @transform_2(%arg0: i32) -> (i32, i32) {
    %c0_i32 = arith.constant 0 : i32
    %c0_i32_0 = arith.constant 0 : i32
    %c0_i32_1 = arith.constant 0 : i32
    return %c0_i32, %c0_i32_0 : i32, i32
  }
  func.func @transform_3(%arg0: i32) -> (i32, i32) {
    %c0_i32 = arith.constant 0 : i32
    %c0_i32_0 = arith.constant 0 : i32
    %c0_i32_1 = arith.constant 0 : i32
    return %c0_i32, %c0_i32_0 : i32, i32
  }
  func.func @transform_4(%arg0: i32) -> (i32, i32) {
    %c0_i32 = arith.constant 0 : i32
    %c0_i32_0 = arith.constant 0 : i32
    %c0_i32_1 = arith.constant 0 : i32
    return %c0_i32, %c0_i32_0 : i32, i32
  }
  func.func @transform_5(%arg0: i32) -> (i32, i32) {
    %c0_i32 = arith.constant 0 : i32
    %c0_i32_0 = arith.constant 0 : i32
    %c0_i32_1 = arith.constant 0 : i32
    return %c0_i32, %c0_i32_0 : i32, i32
  }
  func.func @transform_6(%arg0: i32) -> (i32, i32) {
    %c0_i32 = arith.constant 0 : i32
    %c0_i32_0 = arith.constant 0 : i32
    %c0_i32_1 = arith.constant 0 : i32
    return %c0_i32, %c0_i32_0 : i32, i32
  }
  func.func @transform_7(%arg0: i32) -> (i32, i32) {
    %c0_i32 = arith.constant 0 : i32
    %c0_i32_0 = arith.constant 0 : i32
    return %c0_i32, %arg0 : i32, i32
  }
}

</mosaic_0001>

<bundles_post_ra>
// kernel: tpu_custom_call.1
= control target key start
LH: loop header
LB: loop body
LE: loop exit
PB: predicated region body
PF: predicated region fallthrough
CT: control target
= control target key end

     0   :  { %vm59_vm0 = vcmask 64512   ;;  %v1026_v5 = vmov 0.0   ;;  %v1027_v9 = vmov 0   ;;  %s1351_s0 = inlined_call_operand.vmem [shape: f32[8,512], index: 0, kind: input, shape index: {}]   ;;  %s1352_s1 = inlined_call_operand.vmem [shape: f32[32,8], index: 1, kind: input, shape index: {}]   ;;  %s1353_s2 = inlined_call_operand.vmem [shape: f32[32,1], index: 2, kind: input, shape index: {}]   ;;  %s1354_s3 = inlined_call_operand.vmem [shape: f32[32,32], index: 3, kind: input, shape index: {}]   ;;  %s1355_s4 = inlined_call_operand.vmem [shape: f32[32,1], index: 4, kind: input, shape index: {}]   ;;  %s1356_s5 = inlined_call_operand.vmem [shape: f32[48,32], index: 5, kind: input, shape index: {}]   ;;  %s1357_s6 = inlined_call_operand.vmem [shape: f32[48,1], index: 6, kind: input, shape index: {}]   ;;  %s1358_s7 = inlined_call_operand.hbm [shape: f32[48,512], index: 7, kind: output, shape index: {}]  }
   0x1   :  { %v1074_v0 = vld [vmem:[%s1351_s0 + $0x8] sm:$0xff]  ;;  %v1079_v1 = vld [vmem:[%s1351_s0 + $0x18] sm:$0xff]  ;;  %v1084_v2 = vld [vmem:[%s1351_s0] sm:$0xff]  ;;  %136 = vmatprep.mubr.f32.mxu0 %v1026_v5  ;;  %225 = vmatprep.mubr.f32.mxu1 %v1026_v5 }
   0x2   :  { %72 = vmatprep.subr.mxu0 %v1074_v0  ;;  %161 = vmatprep.subr.mxu1 %v1079_v1  ;;  %v1091_v3 = vld [vmem:[%s1351_s0 + $0x10] sm:$0xff]  ;;  %v31_v4 = vld [vmem:[%s1352_s1] sm:$0xff]  ;;  %v32_v8 = vld [vmem:[%s1352_s1 + $0x8] sm:$0xff] }
   0x3   :  { %73 = vmatpush1.msra.mxu0 %v1084_v2  ;;  %162 = vmatpush1.msra.mxu1 %v1091_v3  ;;  %v35_v6 = vld [vmem:[%s1353_s2] sm:$0xff]  ;;  %v37_v7 = vld [vmem:[%s1353_s2 + $0x10] sm:$0xff] }
   0x4   :  { %895 = vmatmul.mubr.msk.f32.vlgmr.msra.gmra.mrb[0].mxu0 %vm59_vm0, %v31_v4  ;;  %899 = vmatmul.mubr.msk.f32.vlgmr.msra.gmra.mrb[0].mxu1 %vm59_vm0, %v31_v4 }
   0x5   :  { %142 = vmatprep.mubr.f32.mxu0 %v1026_v5  ;;  %231 = vmatprep.mubr.f32.mxu1 %v1026_v5 }
   0x6   :  { %960 = vset.pattern.permute.xlu0 %v1027_v9  ;;  %961 = vset.pattern.permute.xlu1 %v1027_v9 }
   0x7   :  { %41 = vperm.xlu0 %960, %v35_v6   ;;  %51 = vperm.xlu1 %961, %v37_v7  }
   0x8   :  { %12 = vsyncpa [#allocation3], 0  ;;  %896 = vmatmul.mubr.msk.f32.gmra.mrb[2].mxu0 %vm59_vm0, %v32_v8  ;;  %900 = vmatmul.mubr.msk.f32.gmra.mrb[2].mxu1 %vm59_vm0, %v32_v8  ;;  %v36_v10 = vld [vmem:[%s1353_s2 + $0x8] sm:$0xff]  ;;  %v38_v11 = vld [vmem:[%s1353_s2 + $0x18] sm:$0xff]  ;;  %vm294_vm1 = vcmask 261120  }
   0x9   :  { %148 = vmatprep.mubr.f32.mxu0 %v1026_v5  ;;  %237 = vmatprep.mubr.f32.mxu1 %v1026_v5  ;;  %v33_v12 = vld [vmem:[%s1352_s1 + $0x10] sm:$0xff]  ;;  %v254_v13 = vld [vmem:[%s1355_s4] sm:$0xff]  ;;  %v255_v14 = vld [vmem:[%s1355_s4 + $0x8] sm:$0xff] }
   0xa   :  { %v34_v15 = vld [vmem:[%s1352_s1 + $0x18] sm:$0xff]  ;;  %v256_v16 = vld [vmem:[%s1355_s4 + $0x10] sm:$0xff]  ;;  %v495_v18 = vld [vmem:[%s1357_s6 + $0x20] sm:$0xff] }
   0xb   :  { %46 = vperm.xlu0 %960, %v36_v10   ;;  %56 = vperm.xlu1 %961, %v38_v11   ;;  %v257_v17 = vld [vmem:[%s1355_s4 + $0x18] sm:$0xff]  ;;  %v496_v19 = vld [vmem:[%s1357_s6 + $0x28] sm:$0xff]  ;;  %v493_v20 = vld [vmem:[%s1357_s6 + $0x10] sm:$0xff] }
   0xc   :  { %897 = vmatmul.mubr.msk.f32.gmra.mrb[4].mxu0 %vm59_vm0, %v33_v12  ;;  %901 = vmatmul.mubr.msk.f32.gmra.mrb[4].mxu1 %vm59_vm0, %v33_v12  ;;  %v494_v21 = vld [vmem:[%s1357_s6 + $0x18] sm:$0xff]  ;;  %v491_v22 = vld [vmem:[%s1357_s6] sm:$0xff]  ;;  %v492_v23 = vld [vmem:[%s1357_s6 + $0x8] sm:$0xff] }
   0xd   :  { %154 = vmatprep.mubr.f32.mxu0 %v1026_v5  ;;  %243 = vmatprep.mubr.f32.mxu1 %v1026_v5 }
   0xf   :  { %276 = vperm.xlu0 %960, %v254_v13   ;;  %281 = vperm.xlu1 %961, %v255_v14  }
  0x10   :  { %898 = vmatmul.mubr.msk.f32.gmra.mrb[6].mxu0 %vm59_vm0, %v34_v15  ;;  %902 = vmatmul.mubr.msk.f32.gmra.mrb[6].mxu1 %vm59_vm0, %v34_v15 }
  0x11   :  { %371 = vmatprep.mubr.f32.mxu0 %v1026_v5  ;;  %460 = vmatprep.mubr.f32.mxu1 %v1026_v5 }
  0x13   :  { %286 = vperm.xlu0 %960, %v256_v16   ;;  %291 = vperm.xlu1 %961, %v257_v17  }
  0x17   :  { %535 = vperm.xlu0 %960, %v495_v18   ;;  %540 = vperm.xlu1 %961, %v496_v19  }
  0x1b   :  { %525 = vperm.xlu0 %960, %v493_v20   ;;  %530 = vperm.xlu1 %961, %v494_v21  }
  0x1f   :  { %515 = vperm.xlu0 %960, %v491_v22   ;;  %520 = vperm.xlu1 %961, %v492_v23  }
  0x86   :  { %v42_v24 = vpop.permute.xlu0 %41  ;;  %v52_v30 = vpop.permute.xlu1 %51 }
  0x8a   :  { %v47_v29 = vpop.permute.xlu0 %46  ;;  %v57_v59 = vpop.permute.xlu1 %56 }
  0xd7   :  { %v138_v25 = vpop.f32.mrb[0].mxu0  ;;  %v227_v26 = vpop.f32.mrb[0].mxu1 }
  0xd8   :  { %v140_v27 = vpop.f32.mrb[1].mxu0  ;;  %v229_v28 = vpop.f32.mrb[1].mxu1  ;;  %v139_v31 = vadd.f32 %v138_v25, %v42_v24  ;;  %v228_v32 = vadd.f32 %v227_v26, %v42_v24  ;;  %v250_v25 = vld [vmem:[%s1354_s3] sm:$0xff]  ;;  %v251_v26 = vld [vmem:[%s1354_s3 + $0x8] sm:$0xff] }
  0xd9   :  { %v141_v33 = vadd.f32 %v140_v27, %v42_v24  ;;  %v230_v34 = vadd.f32 %v229_v28, %v42_v24  ;;  %v252_v27 = vld [vmem:[%s1354_s3 + $0x10] sm:$0xff]  ;;  %v253_v28 = vld [vmem:[%s1354_s3 + $0x18] sm:$0xff] }
  0xda   :  { %v258_v43 = vmax.f32 %v139_v31, 0.0  ;;  %v260_v44 = vmax.f32 %v228_v32, 0.0 }
  0xdb   :  { %v144_v35 = vpop.f32.mrb[2].mxu0  ;;  %v233_v36 = vpop.f32.mrb[2].mxu1  ;;  %v259_v47 = vmax.f32 %v141_v33, 0.0  ;;  %v261_v48 = vmax.f32 %v230_v34, 0.0 }
  0xdc   :  { %v145_v37 = vadd.f32 %v144_v35, %v47_v29  ;;  %v234_v38 = vadd.f32 %v233_v36, %v47_v29  ;;  %v146_v39 = vpop.f32.mrb[3].mxu0  ;;  %v235_v40 = vpop.f32.mrb[3].mxu1 }
  0xdd   :  { %v147_v41 = vadd.f32 %v146_v39, %v47_v29  ;;  %v236_v42 = vadd.f32 %v235_v40, %v47_v29  ;;  %v277_v33 = vpop.permute.xlu0 %276  ;;  %v282_v34 = vpop.permute.xlu1 %281 }
  0xde   :  { %v262_v45 = vmax.f32 %v145_v37, 0.0  ;;  %v264_v46 = vmax.f32 %v234_v38, 0.0 }
  0xdf   :  { %v263_v49 = vmax.f32 %v147_v41, 0.0  ;;  %v265_v50 = vmax.f32 %v236_v42, 0.0  ;;  %v150_v51 = vpop.f32.mrb[4].mxu0  ;;  %v239_v52 = vpop.f32.mrb[4].mxu1 }
  0xe0   :  { %v925_v53 = vpack.c.bf16 %v262_v45, %v258_v43  ;;  %v933_v54 = vpack.c.bf16 %v264_v46, %v260_v44  ;;  %v152_v55 = vpop.f32.mrb[5].mxu0  ;;  %v241_v56 = vpop.f32.mrb[5].mxu1  ;;  %v151_v60 = vadd.f32 %v150_v51, %v52_v30  ;;  %v240_v61 = vadd.f32 %v239_v52, %v52_v30 }
  0xe1   :  { %v923_v57 = vpack.c.bf16 %v263_v49, %v259_v47  ;;  %v931_v58 = vpack.c.bf16 %v265_v50, %v261_v48  ;;  %v153_v62 = vadd.f32 %v152_v55, %v52_v30  ;;  %v242_v63 = vadd.f32 %v241_v56, %v52_v30 }
  0xe2   :  { %v266_v13 = vmax.f32 %v151_v60, 0.0  ;;  %v268_v14 = vmax.f32 %v240_v61, 0.0  ;;  %v287_v61 = vpop.permute.xlu0 %286 }
  0xe3   :  { %v156_v4 = vpop.f32.mrb[6].mxu0  ;;  %v245_v6 = vpop.f32.mrb[6].mxu1  ;;  %924 = vmatprep.subr.bf16.mxu0 %v923_v57  ;;  %932 = vmatprep.subr.bf16.mxu1 %v931_v58  ;;  %v267_v17 = vmax.f32 %v153_v62, 0.0  ;;  %v269_v18 = vmax.f32 %v242_v63, 0.0 }
  0xe4   :  { %v157_v7 = vadd.f32 %v156_v4, %v57_v59  ;;  %v246_v8 = vadd.f32 %v245_v6, %v57_v59  ;;  %v158_v9 = vpop.f32.mrb[7].mxu0  ;;  %v247_v10 = vpop.f32.mrb[7].mxu1  ;;  %926 = vmatpush1.bf16.msra.mxu0 %v925_v53  ;;  %934 = vmatpush1.bf16.msra.mxu1 %v933_v54 }
  0xe5   :  { %v159_v11 = vadd.f32 %v158_v9, %v57_v59  ;;  %v248_v12 = vadd.f32 %v247_v10, %v57_v59  ;;  %v292_v4 = vpop.permute.xlu1 %291 }
  0xe6   :  { %v270_v15 = vmax.f32 %v157_v7, 0.0  ;;  %v272_v16 = vmax.f32 %v246_v8, 0.0 }
  0xe7   :  { %v271_v19 = vmax.f32 %v159_v11, 0.0  ;;  %v273_v20 = vmax.f32 %v248_v12, 0.0 }
  0xe8   :  { %v929_v21 = vpack.c.bf16 %v270_v15, %v266_v13  ;;  %v937_v22 = vpack.c.bf16 %v272_v16, %v268_v14 }
  0xe9   :  { %v927_v23 = vpack.c.bf16 %v271_v19, %v267_v17  ;;  %v935_v24 = vpack.c.bf16 %v273_v20, %v269_v18 }
  0xeb   :  { %928 = vmatprep.subr.bf16.mxu0 %v927_v23  ;;  %936 = vmatprep.subr.bf16.mxu1 %v935_v24 }
  0xec   :  { %930 = vmatpush1.bf16.msra.mxu0 %v929_v21  ;;  %938 = vmatpush1.bf16.msra.mxu1 %v937_v22 }
  0xef   :  { %903 = vmatmul.mubr.msk.f32.vlgmr.msra.gmra.mrb[8].mxu0 %vm294_vm1, %v250_v25  ;;  %907 = vmatmul.mubr.msk.f32.vlgmr.msra.gmra.mrb[8].mxu1 %vm294_vm1, %v250_v25 }
  0xf0   :  { %377 = vmatprep.mubr.f32.mxu0 %v1026_v5  ;;  %466 = vmatprep.mubr.f32.mxu1 %v1026_v5 }
  0xf3   :  { %904 = vmatmul.mubr.msk.f32.gmra.mrb[10].mxu0 %vm294_vm1, %v251_v26  ;;  %908 = vmatmul.mubr.msk.f32.gmra.mrb[10].mxu1 %vm294_vm1, %v251_v26 }
  0xf4   :  { %383 = vmatprep.mubr.f32.mxu0 %v1026_v5  ;;  %472 = vmatprep.mubr.f32.mxu1 %v1026_v5 }
  0xf7   :  { %905 = vmatmul.mubr.msk.f32.gmra.mrb[12].mxu0 %vm294_vm1, %v252_v27  ;;  %909 = vmatmul.mubr.msk.f32.gmra.mrb[12].mxu1 %vm294_vm1, %v252_v27 }
  0xf8   :  { %389 = vmatprep.mubr.f32.mxu0 %v1026_v5  ;;  %478 = vmatprep.mubr.f32.mxu1 %v1026_v5 }
  0xfb   :  { %906 = vmatmul.mubr.msk.f32.gmra.mrb[14].mxu0 %vm294_vm1, %v253_v28  ;;  %910 = vmatmul.mubr.msk.f32.gmra.mrb[14].mxu1 %vm294_vm1, %v253_v28 }
  0xfc   :  { %625 = vmatprep.mubr.f32.mxu0 %v1026_v5  ;;  %726 = vmatprep.mubr.f32.mxu1 %v1026_v5 }
 0x1c2   :  { %v373_v29 = vpop.f32.mrb[8].mxu0  ;;  %v462_v30 = vpop.f32.mrb[8].mxu1 }
 0x1c3   :  { %v375_v31 = vpop.f32.mrb[9].mxu0  ;;  %v464_v32 = vpop.f32.mrb[9].mxu1  ;;  %v374_v35 = vadd.f32 %v373_v29, %v277_v33  ;;  %v463_v36 = vadd.f32 %v462_v30, %v277_v33  ;;  %v485_v30 = vld [vmem:[%s1356_s5] sm:$0xff] }
 0x1c4   :  { %v376_v37 = vadd.f32 %v375_v31, %v277_v33  ;;  %v465_v38 = vadd.f32 %v464_v32, %v277_v33  ;;  %v486_v31 = vld [vmem:[%s1356_s5 + $0x8] sm:$0xff]  ;;  %v487_v32 = vld [vmem:[%s1356_s5 + $0x10] sm:$0xff]  ;;  %v488_v33 = vld [vmem:[%s1356_s5 + $0x18] sm:$0xff] }
 0x1c5   :  { %v497_v47 = vmax.f32 %v374_v35, 0.0  ;;  %v499_v48 = vmax.f32 %v463_v36, 0.0  ;;  %v490_v35 = vld [vmem:[%s1356_s5 + $0x28] sm:$0xff]  ;;  %v1235_v36 = vpop.permute.xlu0 %535 }
 0x1c6   :  { %v379_v39 = vpop.f32.mrb[10].mxu0  ;;  %v468_v40 = vpop.f32.mrb[10].mxu1  ;;  %v498_v51 = vmax.f32 %v376_v37, 0.0  ;;  %v500_v52 = vmax.f32 %v465_v38, 0.0 }
 0x1c7   :  { %v380_v41 = vadd.f32 %v379_v39, %v282_v34  ;;  %v469_v42 = vadd.f32 %v468_v40, %v282_v34  ;;  %v381_v43 = vpop.f32.mrb[11].mxu0  ;;  %v470_v44 = vpop.f32.mrb[11].mxu1 }
 0x1c8   :  { %v382_v45 = vadd.f32 %v381_v43, %v282_v34  ;;  %v471_v46 = vadd.f32 %v470_v44, %v282_v34  ;;  %v489_v34 = vld [vmem:[%s1356_s5 + $0x20] sm:$0xff]  ;;  %s1028_s5 = smov [#allocation2]  }
 0x1c9   :  { %v501_v49 = vmax.f32 %v380_v41, 0.0  ;;  %v503_v50 = vmax.f32 %v469_v42, 0.0  ;;  %v526_v41 = vpop.permute.xlu0 %525  ;;  %v1237_v42 = vpop.permute.xlu1 %540  ;;  %s884_s10 = sshll.u32 %s1028_s5, 4  ;;  %s885_s10 = int_to_ptr.vmem [resolvable:$true] %s884_s10 }
 0x1ca   :  { %v502_v53 = vmax.f32 %v382_v45, 0.0  ;;  %v504_v54 = vmax.f32 %v471_v46, 0.0  ;;  %v385_v55 = vpop.f32.mrb[12].mxu0  ;;  %v474_v56 = vpop.f32.mrb[12].mxu1  ;;  %s1002_s0 = scalar_lea.vmem %s885_s10, 3072  ;;  %p1007_p1 = scmp.lt.s32.totalorder %s885_s10, %s885_s10 }
 0x1cb   :  { %v941_v57 = vpack.c.bf16 %v501_v49, %v497_v47  ;;  %v949_v58 = vpack.c.bf16 %v503_v50, %v499_v48  ;;  %v387_v59 = vpop.f32.mrb[13].mxu0  ;;  %v476_v60 = vpop.f32.mrb[13].mxu1  ;;  %v386_v6 = vadd.f32 %v385_v55, %v287_v61  ;;  %v475_v7 = vadd.f32 %v474_v56, %v287_v61  ;;  %p1003_p0 = scmp.ne.s32.totalorder %s885_s10, %s1002_s0  ;;  %p1008_p2 = scmp.lt.s32.totalorder %s1002_s0, %s1002_s0 }
 0x1cc   :  { %v939_v62 = vpack.c.bf16 %v502_v53, %v498_v51  ;;  %v947_v63 = vpack.c.bf16 %v504_v54, %v500_v52  ;;  %v388_v8 = vadd.f32 %v387_v59, %v287_v61  ;;  %v477_v9 = vadd.f32 %v476_v60, %v287_v61 }
 0x1cd   :  { %v505_v18 = vmax.f32 %v386_v6, 0.0  ;;  %v507_v19 = vmax.f32 %v475_v7, 0.0  ;;  %v516_v54 = vpop.permute.xlu0 %515  ;;  %v531_v55 = vpop.permute.xlu1 %530  ;;  %p1009_p3 = por %p1008_p2, %p1007_p1 }
 0x1ce   :  { %v391_v10 = vpop.f32.mrb[14].mxu0  ;;  %v480_v11 = vpop.f32.mrb[14].mxu1  ;;  %940 = vmatprep.subr.bf16.mxu0 %v939_v62  ;;  %948 = vmatprep.subr.bf16.mxu1 %v947_v63  ;;  %v506_v22 = vmax.f32 %v388_v8, 0.0  ;;  %v508_v23 = vmax.f32 %v477_v9, 0.0 }
 0x1cf   :  { %v392_v12 = vadd.f32 %v391_v10, %v292_v4  ;;  %v481_v13 = vadd.f32 %v480_v11, %v292_v4  ;;  %v393_v14 = vpop.f32.mrb[15].mxu0  ;;  %v482_v15 = vpop.f32.mrb[15].mxu1  ;;  %942 = vmatpush1.bf16.msra.mxu0 %v941_v57  ;;  %950 = vmatpush1.bf16.msra.mxu1 %v949_v58  ;;  %p1010_p4 = pnand %p1009_p3, %p1003_p0 }
 0x1d0   :  { %v394_v16 = vadd.f32 %v393_v14, %v292_v4  ;;  %v483_v17 = vadd.f32 %v482_v15, %v292_v4 }
 0x1d1   :  { %v509_v20 = vmax.f32 %v392_v12, 0.0  ;;  %v511_v21 = vmax.f32 %v481_v13, 0.0 }
 0x1d2   :  { %v510_v24 = vmax.f32 %v394_v16, 0.0  ;;  %v512_v25 = vmax.f32 %v483_v17, 0.0 }
 0x1d3   :  { %v945_v26 = vpack.c.bf16 %v509_v20, %v505_v18  ;;  %v953_v27 = vpack.c.bf16 %v511_v21, %v507_v19 }
 0x1d4   :  { %v943_v28 = vpack.c.bf16 %v510_v24, %v506_v22  ;;  %v951_v29 = vpack.c.bf16 %v512_v25, %v508_v23 }
 0x1d6   :  { %944 = vmatprep.subr.bf16.mxu0 %v943_v28  ;;  %952 = vmatprep.subr.bf16.mxu1 %v951_v29 }
 0x1d7   :  { %946 = vmatpush1.bf16.msra.mxu0 %v945_v26  ;;  %954 = vmatpush1.bf16.msra.mxu1 %v953_v27 }
 0x1da   :  { %911 = vmatmul.mubr.msk.f32.vlgmr.msra.gmra.mrb[16].mxu0 %vm294_vm1, %v485_v30  ;;  %917 = vmatmul.mubr.msk.f32.vlgmr.msra.gmra.mrb[16].mxu1 %vm294_vm1, %v485_v30 }
 0x1db   :  { %631 = vmatprep.mubr.f32.mxu0 %v1026_v5  ;;  %732 = vmatprep.mubr.f32.mxu1 %v1026_v5 }
 0x1de   :  { %912 = vmatmul.mubr.msk.f32.gmra.mrb[18].mxu0 %vm294_vm1, %v486_v31  ;;  %918 = vmatmul.mubr.msk.f32.gmra.mrb[18].mxu1 %vm294_vm1, %v486_v31 }
 0x1df   :  { %637 = vmatprep.mubr.f32.mxu0 %v1026_v5  ;;  %738 = vmatprep.mubr.f32.mxu1 %v1026_v5 }
 0x1e2   :  { %913 = vmatmul.mubr.msk.f32.gmra.mrb[20].mxu0 %vm294_vm1, %v487_v32  ;;  %919 = vmatmul.mubr.msk.f32.gmra.mrb[20].mxu1 %vm294_vm1, %v487_v32 }
 0x1e3   :  { %643 = vmatprep.mubr.f32.mxu0 %v1026_v5  ;;  %744 = vmatprep.mubr.f32.mxu1 %v1026_v5 }
 0x1e6   :  { %914 = vmatmul.mubr.msk.f32.gmra.mrb[22].mxu0 %vm294_vm1, %v488_v33  ;;  %920 = vmatmul.mubr.msk.f32.gmra.mrb[22].mxu1 %vm294_vm1, %v488_v33 }
 0x1e7   :  { %649 = vmatprep.mubr.f32.mxu0 %v1026_v5  ;;  %750 = vmatprep.mubr.f32.mxu1 %v1026_v5 }
 0x1ea   :  { %915 = vmatmul.mubr.msk.f32.gmra.mrb[24].mxu0 %vm294_vm1, %v489_v34  ;;  %921 = vmatmul.mubr.msk.f32.gmra.mrb[24].mxu1 %vm294_vm1, %v489_v34 }
 0x1eb   :  { %655 = vmatprep.mubr.f32.mxu0 %v1026_v5  ;;  %756 = vmatprep.mubr.f32.mxu1 %v1026_v5 }
 0x1ee   :  { %916 = vmatmul.mubr.msk.f32.gmra.mrb[26].mxu0 %vm294_vm1, %v490_v35  ;;  %922 = vmatmul.mubr.msk.f32.gmra.mrb[26].mxu1 %vm294_vm1, %v490_v35 }
 0x2ad   :  { %v627_v37 = vpop.f32.mrb[16].mxu0  ;;  %v728_v38 = vpop.f32.mrb[16].mxu1 }
 0x2ae   :  { %v629_v39 = vpop.f32.mrb[17].mxu0  ;;  %v730_v40 = vpop.f32.mrb[17].mxu1  ;;  %v1247_v58 = vadd.f32 %v627_v37, %v516_v54  ;;  %v1249_v59 = vadd.f32 %v728_v38, %v516_v54 }
 0x2af   :  { %v1251_v15 = vadd.f32 %v629_v39, %v516_v54  ;;  %v1253_v18 = vadd.f32 %v730_v40, %v516_v54 }
 0x2b0   :  { %v807_v29 = vsub.f32 %v1084_v2, %v1247_v58  ;;  %v809_v30 = vsub.f32 %v1091_v3, %v1249_v59 }
 0x2b1   :  { %v1239_v43 = vpop.f32.mrb[18].mxu0  ;;  %v1241_v5 = vpop.f32.mrb[18].mxu1  ;;  %v808_v31 = vsub.f32 %v1074_v0, %v1251_v15  ;;  %v810_v32 = vsub.f32 %v1079_v1, %v1253_v18 }
 0x2b2   :  { %v1243_v44 = vpop.f32.mrb[19].mxu0  ;;  %v1245_v45 = vpop.f32.mrb[19].mxu1 }
 0x2b5   :  { %v639_v46 = vpop.f32.mrb[20].mxu0  ;;  %v740_v47 = vpop.f32.mrb[20].mxu1 }
 0x2b6   :  { %v640_v48 = vadd.f32 %v639_v46, %v526_v41  ;;  %v741_v49 = vadd.f32 %v740_v47, %v526_v41  ;;  %v641_v50 = vpop.f32.mrb[21].mxu0  ;;  %v742_v51 = vpop.f32.mrb[21].mxu1 }
 0x2b7   :  { %v642_v52 = vadd.f32 %v641_v50, %v526_v41  ;;  %v743_v53 = vadd.f32 %v742_v51, %v526_v41  ;;  %v521_v47 = vpop.permute.xlu1 %520 }
 0x2b8   :  { %v811_v56 = vsub.f32 0.0, %v640_v48  ;;  %v813_v57 = vsub.f32 0.0, %v741_v49  ;;  %v634_v51 = vadd.f32 %v1239_v43, %v521_v47 }
 0x2b9   :  { %v812_v60 = vsub.f32 0.0, %v642_v52  ;;  %v814_v61 = vsub.f32 0.0, %v743_v53  ;;  %v645_v62 = vpop.f32.mrb[22].mxu0  ;;  %v746_v63 = vpop.f32.mrb[22].mxu1  ;;  %v735_v52 = vadd.f32 %v1241_v5, %v521_v47 }
 0x2ba   :  { %v815_v4 = vmul.f32 1.442695, %v811_v56  ;;  %831 = vst [vmem:[#allocation2 + $0x40] sm:$0xff] %v811_v56  ;;  %v819_v6 = vmul.f32 1.442695, %v813_v57  ;;  %833 = vst [vmem:[#allocation2 + $0x50] sm:$0xff] %v813_v57  ;;  %v646_v7 = vadd.f32 %v645_v62, %v531_v55  ;;  %v747_v8 = vadd.f32 %v746_v63, %v531_v55 }
 0x2bb   :  { %v647_v9 = vpop.f32.mrb[23].mxu0  ;;  %v748_v10 = vpop.f32.mrb[23].mxu1  ;;  %v817_v11 = vmul.f32 1.442695, %v812_v60  ;;  %832 = vst [vmem:[#allocation2 + $0x48] sm:$0xff] %v812_v60  ;;  %834 = vst [vmem:[#allocation2 + $0x58] sm:$0xff] %v814_v61 }
 0x2bc   :  { %v821_v12 = vmul.f32 1.442695, %v814_v61  ;;  %v648_v13 = vadd.f32 %v647_v9, %v531_v55  ;;  %v749_v14 = vadd.f32 %v748_v10, %v531_v55  ;;  %962 = vpow2.f32 %v815_v4 }
 0x2bd   :  { %v847_v16 = vsub.f32 0.0, %v646_v7  ;;  %v849_v17 = vsub.f32 0.0, %v747_v8  ;;  %964 = vpow2.f32 %v819_v6  ;;  %v651_v21 = vpop.f32.mrb[24].mxu0  ;;  %v752_v22 = vpop.f32.mrb[24].mxu1  ;;  %v737_v55 = vadd.f32 %v1245_v45, %v521_v47 }
 0x2be   :  { %v848_v19 = vsub.f32 0.0, %v648_v13  ;;  %v850_v20 = vsub.f32 0.0, %v749_v14  ;;  %966 = vpow2.f32 %v817_v11  ;;  %v653_v25 = vpop.f32.mrb[25].mxu0  ;;  %v754_v26 = vpop.f32.mrb[25].mxu1  ;;  %v1264_v33 = vadd.f32 %v651_v21, %v1235_v36 }
 0x2bf   :  { %v851_v23 = vmul.f32 1.442695, %v847_v16  ;;  %867 = vst [vmem:[#allocation2 + $0x60] sm:$0xff] %v847_v16  ;;  %v855_v24 = vmul.f32 1.442695, %v849_v17  ;;  %869 = vst [vmem:[#allocation2 + $0x70] sm:$0xff] %v849_v17  ;;  %968 = vpow2.f32 %v821_v12  ;;  %v1267_v34 = vadd.f32 %v752_v22, %v1235_v36 }
 0x2c0   :  { %v853_v27 = vmul.f32 1.442695, %v848_v19  ;;  %868 = vst [vmem:[#allocation2 + $0x68] sm:$0xff] %v848_v19  ;;  %v857_v28 = vmul.f32 1.442695, %v850_v20  ;;  %870 = vst [vmem:[#allocation2 + $0x78] sm:$0xff] %v850_v20  ;;  %v1270_v38 = vadd.f32 %v653_v25, %v1235_v36  ;;  %v1279_v48 = vadd.f32 %v754_v26, %v1235_v36 }
 0x2c1   :  { %970 = vpow2.f32 %v851_v23  ;;  %v657_v35 = vpop.f32.mrb[26].mxu0  ;;  %v758_v37 = vpop.f32.mrb[26].mxu1  ;;  %v636_v36 = vadd.f32 %v1243_v44, %v521_v47  ;;  %v843_v10 = vsub.f32 %v1084_v2, %v634_v51  ;;  %v845_v11 = vsub.f32 %v1091_v3, %v735_v52 }
 0x2c2   :  { %972 = vpow2.f32 %v855_v24  ;;  %v1273_v39 = vadd.f32 %v657_v35, %v1237_v42  ;;  %v1276_v40 = vadd.f32 %v758_v37, %v1237_v42  ;;  %v659_v41 = vpop.f32.mrb[27].mxu0  ;;  %v760_v46 = vpop.f32.mrb[27].mxu1  ;;  %v846_v3 = vsub.f32 %v1079_v1, %v737_v55 }
 0x2c3   :  { %974 = vpow2.f32 %v853_v27  ;;  %v1282_v49 = vadd.f32 %v659_v41, %v1237_v42  ;;  %v1285_v50 = vadd.f32 %v760_v46, %v1237_v42  ;;  %v844_v19 = vsub.f32 %v1074_v0, %v636_v36 }
 0x2c4   :  { %976 = vpow2.f32 %v857_v28  ;;  %v1291_v53 = vmax.f32 %v1264_v33, %v1273_v39  ;;  %v1295_v54 = vmax.f32 %v1267_v34, %v1276_v40 }
 0x2c5   :  { %v1301_v42 = vmax.f32 %v1270_v38, %v1282_v49  ;;  %v1305_v43 = vmax.f32 %v1279_v48, %v1285_v50 }
 0x2c6   :  { %v963_v5 = vpop.eup %962  ;;  %v767_v56 = vsub.f32 %v1264_v33, %v1291_v53  ;;  %v779_v57 = vsub.f32 %v1273_v39, %v1291_v53  ;;  %v769_v44 = vsub.f32 %v1267_v34, %v1295_v54  ;;  %v781_v45 = vsub.f32 %v1276_v40, %v1295_v54 }
 0x2c7   :  { %v965_v58 = vpop.eup %964  ;;  %v823_v59 = vmul.f32 %v963_v5, %v807_v29  ;;  %v768_v60 = vsub.f32 %v1270_v38, %v1301_v42  ;;  %v780_v61 = vsub.f32 %v1282_v49, %v1301_v42  ;;  %v770_v62 = vsub.f32 %v1279_v48, %v1305_v43 }
 0x2c8   :  { %v967_v63 = vpop.eup %966  ;;  %v825_v4 = vmul.f32 %v965_v58, %v809_v30  ;;  %v771_v6 = vmul.f32 1.442695, %v767_v56  ;;  %v783_v7 = vmul.f32 1.442695, %v779_v57  ;;  %v775_v8 = vmul.f32 1.442695, %v769_v44 }
 0x2c9   :  { %v969_v9 = vpop.eup %968  ;;  %827 = vst [vmem:[#allocation2] sm:$0xff] %v823_v59  ;;  %v824_v12 = vmul.f32 %v967_v63, %v808_v31  ;;  %v787_v13 = vmul.f32 1.442695, %v781_v45  ;;  %v773_v16 = vmul.f32 1.442695, %v768_v60  ;;  %v782_v17 = vsub.f32 %v1285_v50, %v1305_v43 }
 0x2ca   :  { %829 = vst [vmem:[#allocation2 + $0x10] sm:$0xff] %v825_v4  ;;  %v826_v15 = vmul.f32 %v969_v9, %v810_v32  ;;  %978 = vpow2.f32 %v771_v6  ;;  %v785_v2 = vmul.f32 1.442695, %v780_v61  ;;  %v777_v23 = vmul.f32 1.442695, %v770_v62 }
 0x2cb   :  { %v971_v14 = vpop.eup %970  ;;  %828 = vst [vmem:[#allocation2 + $0x8] sm:$0xff] %v824_v12  ;;  %980 = vpow2.f32 %v783_v7  ;;  %v789_v26 = vmul.f32 1.442695, %v782_v17 }
 0x2cc   :  { %v973_v18 = vpop.eup %972  ;;  %v859_v20 = vmul.f32 %v971_v14, %v843_v10  ;;  %830 = vst [vmem:[#allocation2 + $0x18] sm:$0xff] %v826_v15  ;;  %982 = vpow2.f32 %v775_v8 }
 0x2cd   :  { %v975_v21 = vpop.eup %974  ;;  %v861_v22 = vmul.f32 %v973_v18, %v845_v11  ;;  %984 = vpow2.f32 %v787_v13 }
 0x2ce   :  { %v977_v24 = vpop.eup %976  ;;  %863 = vst [vmem:[#allocation2 + $0x20] sm:$0xff] %v859_v20  ;;  %v860_v25 = vmul.f32 %v975_v21, %v844_v19  ;;  %986 = vpow2.f32 %v773_v16 }
 0x2cf   :  { %865 = vst [vmem:[#allocation2 + $0x30] sm:$0xff] %v861_v22  ;;  %v862_v27 = vmul.f32 %v977_v24, %v846_v3  ;;  %988 = vpow2.f32 %v785_v2 }
 0x2d0   :  { %864 = vst [vmem:[#allocation2 + $0x28] sm:$0xff] %v860_v25  ;;  %990 = vpow2.f32 %v777_v23 }
 0x2d1   :  { %866 = vst [vmem:[#allocation2 + $0x38] sm:$0xff] %v862_v27  ;;  %992 = vpow2.f32 %v789_v26 }
 0x2d4   :  { %v979_v0 = vpop.eup %978 }
 0x2d5   :  { %v981_v28 = vpop.eup %980 }
 0x2d6   :  { %v983_v1 = vpop.eup %982  ;;  %v791_v29 = vadd.f32 %v981_v28, %v979_v0 }
 0x2d7   :  { %v985_v30 = vpop.eup %984 }
 0x2d8   :  { %v987_v31 = vpop.eup %986  ;;  %994 = vlog2.f32 %v791_v29  ;;  %v793_v32 = vadd.f32 %v985_v30, %v983_v1 }
 0x2d9   :  { %v989_v35 = vpop.eup %988 }
 0x2da   :  { %v991_v37 = vpop.eup %990  ;;  %996 = vlog2.f32 %v793_v32  ;;  %v792_v41 = vadd.f32 %v989_v35, %v987_v31 }
 0x2db   :  { %v993_v46 = vpop.eup %992 }
 0x2dc   :  { %998 = vlog2.f32 %v792_v41  ;;  %v794_v47 = vadd.f32 %v993_v46, %v991_v37 }
 0x2de   :  { %1000 = vlog2.f32 %v794_v47 }
 0x2e2   :  { %v995_v51 = vpop.eup %994 }
 0x2e3   :  { %v796_v52 = vmul.f32 0.6931472, %v995_v51 }
 0x2e4   :  { %v997_v36 = vpop.eup %996 }
 0x2e5   :  { %v803_v55 = vadd.f32 %v796_v52, %v1291_v53  ;;  %v800_v5 = vmul.f32 0.6931472, %v997_v36 }
 0x2e6   :  { %v999_v56 = vpop.eup %998 }
 0x2e7   :  { %v835_v57 = vsub.f32 %v1264_v33, %v803_v55  ;;  %v871_v44 = vsub.f32 %v1273_v39, %v803_v55  ;;  %v805_v45 = vadd.f32 %v800_v5, %v1295_v54  ;;  %v798_v58 = vmul.f32 0.6931472, %v999_v56 }
 0x2e8   :  { %v1001_v59 = vpop.eup %1000 }
 0x2e9   :  { %839 = vst [vmem:[#allocation2 + $0x80] sm:$0xff] %v835_v57  ;;  %875 = vst [vmem:[#allocation2 + $0xa0] sm:$0xff] %v871_v44  ;;  %v837_v60 = vsub.f32 %v1267_v34, %v805_v45  ;;  %v873_v61 = vsub.f32 %v1276_v40, %v805_v45  ;;  %v804_v62 = vadd.f32 %v798_v58, %v1301_v42  ;;  %v802_v63 = vmul.f32 0.6931472, %v1001_v59 }
 0x2eb   :  { %841 = vst [vmem:[#allocation2 + $0x90] sm:$0xff] %v837_v60  ;;  %877 = vst [vmem:[#allocation2 + $0xb0] sm:$0xff] %v873_v61  ;;  %v836_v33 = vsub.f32 %v1270_v38, %v804_v62  ;;  %v872_v39 = vsub.f32 %v1282_v49, %v804_v62  ;;  %v806_v53 = vadd.f32 %v802_v63, %v1305_v43 }
 0x2ed   :  { %840 = vst [vmem:[#allocation2 + $0x88] sm:$0xff] %v836_v33  ;;  %876 = vst [vmem:[#allocation2 + $0xa8] sm:$0xff] %v872_v39  ;;  %v838_v34 = vsub.f32 %v1279_v48, %v806_v53  ;;  %v874_v40 = vsub.f32 %v1285_v50, %v806_v53 }
 0x2ef   :  { %842 = vst [vmem:[#allocation2 + $0x98] sm:$0xff] %v838_v34  ;;  %878 = vst [vmem:[#allocation2 + $0xb8] sm:$0xff] %v874_v40 }
 0x2f0   :  { %1013 = shalt.err (!%p1010_p4)
}
 0x2f1   :  { %s1014_s12 = scalar_lea.hbm %s1358_s7, 3072 }
 0x2f2   :  { %p1015_p5 = scmp.ne.s32.totalorder %s1358_s7, %s1014_s12  ;;  %p1018_p6 = scmp.lt.u32.totalorder %s1014_s12, %s1358_s7 }
 0x2f4   :  { %p1020_p7 = pnand %p1018_p6, %p1015_p5 }
 0x2f6   :  { %1023 = shalt.err (!%p1020_p7)
}
 0x2f7   :  { %s1029_s6 = smov 512   ;;  %s1030_s17 = smov 32  }
 0x2f8   :  { %890 = dma.vmem_to_hbm [thread:$0]  %s885_s10, 3072, %s1358_s7, [#allocation3], %s1029_s6, %s1029_s6, %s1030_s17  }
 0x2f9   :  { %1024 = dma.done.wait [#allocation3], 3072  }
 0x2fa   :  { %1025 = vsyncadd [#allocation3], 4294964224 }
 0x2fb   :  { %894 = vsyncpa [#allocation3], 1 }

</bundles_post_ra>
